<compile_context>
chip_gen: v7x
topology: tpu7x:2x2x1
jax: 0.10.0
libtpu: 0.0.40
codegen_flags: <defaults>
</compile_context>

<pallas_src>
import functools

import jax
import jax.numpy as jnp
from jax.experimental import pallas as pl
from jax.experimental.pallas import tpu as pltpu


# ---------------------------------------------------------------------------
# Kernel 1: WeightedSmoothL1Loss.forward (unreduced), matching the PyTorch spec.
# ---------------------------------------------------------------------------
def _wsl1_kernel(x_ref, t_ref, w_ref, o_ref, *, beta):
    x = x_ref[...].astype(jnp.float32)                      # (TA, K)
    t = t_ref[...].astype(jnp.float32)                      # (TA, K)
    w = w_ref[...].astype(jnp.float32)                      # (TA, 1)
    t = jnp.where(jnp.isnan(t), x, t)                       # NaN targets -> preds
    n = jnp.abs(x - t)
    if beta < 1e-5:                                         # trace-time branch (pure L1)
        loss = n
    else:
        loss = jnp.where(n < beta, 0.5 * n * n / beta, n - 0.5 * beta)
    o_ref[...] = (loss * w).astype(o_ref.dtype)


def weighted_smooth_l1_loss(x, target, weights=None, *, beta=1.0 / 9.0,
                            tile_anchors=512):
    """Pallas forward of WeightedSmoothL1Loss: (B, N, K) -> (B, N, K), no reduction."""
    B, N, K = x.shape
    if weights is None:
        weights = jnp.ones((B, N), dtype=jnp.float32)       # module allows weights=None
    w3 = weights.reshape(B, N, 1)

    ta = max(8, min(tile_anchors, N))
    if N % ta != 0 or ta % 8 != 0:
        ta = N                                              # full-extent block is always legal
    grid = (B, N // ta)

    kernel = functools.partial(_wsl1_kernel, beta=beta)
    # TODO(synk): output lane dim is #codes (=7) to keep the module's native
    # (B, N, K) layout; a lane-dense variant would need the code axis off lanes.
    return pl.pallas_call(
        kernel,
        out_shape=jax.ShapeDtypeStruct((B, N, K), jnp.float32),
        grid=grid,
        in_specs=[
            pl.BlockSpec((None, ta, K), lambda b, i: (b, i, 0)),
            pl.BlockSpec((None, ta, K), lambda b, i: (b, i, 0)),
            pl.BlockSpec((None, ta, 1), lambda b, i: (b, i, 0)),
        ],
        out_specs=pl.BlockSpec((None, ta, K), lambda b, i: (b, i, 0)),
        compiler_params=pltpu.CompilerParams(
            dimension_semantics=("parallel", "parallel")),
    )(x, target, w3)


# ---------------------------------------------------------------------------
# Kernel 2: full PointPillar multiclass loss (WeightedSmoothL1Loss embedded).
# ---------------------------------------------------------------------------
def _pp_loss_kernel(cls_ref, cid_ref, rm_ref, tgt_ref, pos_ref, obj_ref, out_ref,
                    *, num_class, alpha, gamma, beta):
    f32 = jnp.float32
    C = num_class
    A, ts, lanes = cid_ref.shape                            # (A, TS, 128)

    # ---- anchor-wise weights (unnormalized; /pos_norm is applied in glue) ----
    pos = pos_ref[...].astype(f32)                          # (A, TS, 128)
    positives = (pos > 0).astype(f32)
    negatives = (pos == 0).astype(f32)
    # NOTE: kept general (does not assume a strict {0,1} mask); for 0/1 masks
    # `cared` is identically 1 and this is a single cheap VPU multiply per anchor.
    cared = negatives + positives

    # ---- sigmoid focal classification loss (one-hot built in-kernel) ----
    x = cls_ref[...].astype(f32).reshape(A, C, ts, lanes)
    cid = cid_ref[...]                                      # (A, TS, 128) int32
    class_iota = jax.lax.broadcasted_iota(jnp.int32, (A, C, ts, lanes), 1)
    t = (cid[:, None, :, :] == class_iota).astype(f32)      # one-hot, no HBM traffic
    sig = jax.nn.sigmoid(x)
    alpha_w = t * alpha + (1.0 - t) * (1.0 - alpha)
    pt = t * (1.0 - sig) + (1.0 - t) * sig
    if gamma == 2.0:                                        # trace-time specialization
        focal_w = alpha_w * (pt * pt)
    else:
        focal_w = alpha_w * jnp.power(pt, gamma)
    bce = jnp.maximum(x, 0.0) - x * t + jnp.log1p(jnp.exp(-jnp.abs(x)))
    cls_per_anchor = jnp.sum(focal_w * bce, axis=1)         # sum over classes first
    cls_sum = jnp.sum(cls_per_anchor * cared)

    # ---- weighted smooth-L1 regression, sin-difference on rotation row only ----
    p = rm_ref[...].astype(f32).reshape(A, 7, ts, lanes)
    g = tgt_ref[...].astype(f32).reshape(A, 7, ts, lanes)
    p_lin, g_lin = p[:, :6], g[:, :6]
    g_lin = jnp.where(jnp.isnan(g_lin), p_lin, g_lin)       # NaN targets -> preds (rows 0-5)
    p_rot = jnp.sin(p[:, 6]) * jnp.cos(g[:, 6])             # transcendentals on 1 of 7 rows
    g_rot = jnp.cos(p[:, 6]) * jnp.sin(g[:, 6])
    g_rot = jnp.where(jnp.isnan(g_rot), p_rot, g_rot)       # NaN handling on row 6 too

    def smooth_l1(d):
        n = jnp.abs(d)
        if beta < 1e-5:
            return n
        return jnp.where(n < beta, 0.5 * n * n / beta, n - 0.5 * beta)

    reg_per_anchor = jnp.sum(smooth_l1(p_lin - g_lin), axis=1) + smooth_l1(p_rot - g_rot)
    reg_sum = jnp.sum(reg_per_anchor * positives)

    # ---- objectness BCE ----
    so = jax.nn.sigmoid(obj_ref[...].astype(f32))           # (A, TS, 128)
    bce_o = -(pos * jnp.log(so + 1e-6) + (1.0 - pos) * jnp.log(1.0 - so + 1e-6))
    obj_sum = jnp.sum(bce_o)

    out_ref[0, 0] = cls_sum
    out_ref[0, 1] = reg_sum
    out_ref[0, 2] = obj_sum
    out_ref[0, 3] = jnp.sum(positives)


def _pick_tile(s, ts_target):
    """Largest legal sublane-tile: multiple of 8 dividing s, or the full extent."""
    ts = max(1, min(ts_target, s))
    if ts == s:
        return s
    for cand in range(ts, 7, -1):
        if s % cand == 0 and cand % 8 == 0:
            return cand
    return s


def point_pillar_loss_multiclass(psm, rm, obj, targets, pos_equal_one, class_ids,
                                 *, num_class, cls_weight, reg_coe,
                                 alpha=0.25, gamma=2.0, beta=1.0 / 9.0,
                                 tile_positions=16384):
    """JAX/Pallas equivalent of PointPillarLossMultiClass.forward.

    psm:           (B, A*C, H, W)  cls logits (NCHW)        -- free reshape only
    rm:            (B, A*7, H, W)  box regression (NCHW)    -- free reshape only
    obj:           (B, A,   H, W)  objectness logits (NCHW) -- free reshape only
    targets:       (B, H, W, A*7)  regression targets       -- one transpose
    pos_equal_one: (B, H, W, A)    positive anchor mask     -- one transpose
    class_ids:     (B, H, W, A)    int class indices        -- one transpose
    """
    B, AC, H, W = psm.shape
    C = num_class
    assert AC % C == 0, "psm channel dim must be A*num_class"
    A = AC // C
    HW = H * W
    N = HW * A
    assert rm.shape == (B, A * 7, H, W)
    assert obj.shape == (B, A, H, W)
    # TODO(synk): pad the spatial axis when H*W is not a multiple of 128.
    assert HW % 128 == 0, "H*W must be a multiple of 128"
    S = HW // 128
    f32 = jnp.float32

    # Channel-major tensors: contiguous reshapes only (no HBM transpose, no upcast).
    cls4 = psm.reshape(B, A * C, S, 128)
    rm4 = rm.reshape(B, A * 7, S, 128)
    obj4 = obj.reshape(B, A, S, 128)
    # NHWC-sourced tensors: exactly one transpose each.
    tgt4 = jnp.transpose(targets.reshape(B, HW, A, 7), (0, 2, 3, 1)).reshape(B, A * 7, S, 128)
    pos4 = jnp.transpose(pos_equal_one.reshape(B, HW, A), (0, 2, 1)).reshape(B, A, S, 128).astype(f32)
    cid4 = jnp.transpose(class_ids.reshape(B, HW, A), (0, 2, 1)).reshape(B, A, S, 128).astype(jnp.int32)

    ts = _pick_tile(S, max(1, tile_positions // 128))
    nj = S // ts
    grid = (B, nj)

    kernel = functools.partial(_pp_loss_kernel, num_class=C,
                               alpha=alpha, gamma=gamma, beta=beta)

    def spec(rows):
        return pl.BlockSpec((None, rows, ts, 128), lambda b, j: (b, 0, j, 0))

    sums = pl.pallas_call(
        kernel,
        out_shape=jax.ShapeDtypeStruct((B * nj, 4), f32),
        grid=grid,
        in_specs=[spec(A * C), spec(A), spec(A * 7), spec(A * 7), spec(A), spec(A)],
        out_specs=pl.BlockSpec((1, 4), lambda b, j: (b * nj + j, 0),
                               memory_space=pltpu.SMEM),
        compiler_params=pltpu.CompilerParams(
            dimension_semantics=("parallel", "parallel")),
    )(cls4, cid4, rm4, tgt4, pos4, obj4)

    # ---- cheap scalar glue: per-batch normalizer + loss weights ----
    per_b = jnp.sum(sums.reshape(B, nj, 4), axis=1)         # (B, 4)
    pos_norm = jnp.maximum(per_b[:, 3], 1.0)                # clamp(min=1) per batch
    cls_total = jnp.sum(per_b[:, 0] / pos_norm)
    reg_total = jnp.sum(per_b[:, 1] / pos_norm)
    obj_total = jnp.sum(per_b[:, 2])

    conf_loss = cls_total / B / B * cls_weight              # .sum()/B, then /B in forward
    reg_loss = reg_total / B * reg_coe
    obj_loss = obj_total / (B * N)                          # bce.mean() over (B, H, W, A)
    total_loss = reg_loss + conf_loss + obj_loss
    return total_loss, conf_loss, reg_loss, obj_loss


# ---------------------------------------------------------------------------
# Pure-JAX references (validation only).
# ---------------------------------------------------------------------------
def _reference_wsl1(x, target, weights, beta):
    t = jnp.where(jnp.isnan(target), x, target)
    n = jnp.abs(x - t)
    loss = n if beta < 1e-5 else jnp.where(n < beta, 0.5 * n * n / beta, n - 0.5 * beta)
    return loss * weights[..., None]


def _reference_pp_loss(psm, rm, obj, targets, pos_equal_one, class_ids,
                       *, num_class, cls_weight, reg_coe,
                       alpha=0.25, gamma=2.0, beta=1.0 / 9.0):
    B, AC, H, W = psm.shape
    C = num_class
    A = AC // C
    N = H * W * A
    cls_preds = jnp.transpose(psm, (0, 2, 3, 1)).reshape(B, H, W, A, C)
    obj_preds = jnp.transpose(obj, (0, 2, 3, 1))
    box_cls_labels = pos_equal_one.reshape(B, -1)
    positives = (box_cls_labels > 0).astype(jnp.float32)
    negatives = (box_cls_labels == 0).astype(jnp.float32)
    cls_weights = negatives + positives
    reg_weights = positives
    pos_norm = jnp.clip(jnp.sum(positives, axis=1, keepdims=True), 1.0)
    cls_weights = cls_weights / pos_norm
    reg_weights = reg_weights / pos_norm
    t = jax.nn.one_hot(class_ids, C, dtype=jnp.float32)     # (B,H,W,A,C)
    x = cls_preds
    sig = jax.nn.sigmoid(x)
    alpha_w = t * alpha + (1 - t) * (1 - alpha)
    pt = t * (1 - sig) + (1 - t) * sig
    bce = jnp.maximum(x, 0) - x * t + jnp.log1p(jnp.exp(-jnp.abs(x)))
    loss = alpha_w * pt ** gamma * bce * cls_weights.reshape(B, H, W, A, 1)
    conf_loss = jnp.sum(loss) / B / B * cls_weight
    p = jnp.transpose(rm, (0, 2, 3, 1)).reshape(B, N, 7)
    g = targets.reshape(B, N, 7)
    p_rot = jnp.sin(p[..., 6:7]) * jnp.cos(g[..., 6:7])
    g_rot = jnp.cos(p[..., 6:7]) * jnp.sin(g[..., 6:7])
    p_new = jnp.concatenate([p[..., :6], p_rot], -1)
    g_new = jnp.concatenate([g[..., :6], g_rot], -1)
    g_new = jnp.where(jnp.isnan(g_new), p_new, g_new)
    n = jnp.abs(p_new - g_new)
    sl1 = jnp.where(n < beta, 0.5 * n ** 2 / beta, n - 0.5 * beta)
    reg_loss = jnp.sum(sl1 * reg_weights.reshape(B, N, 1)) / B * reg_coe
    so = jax.nn.sigmoid(obj_preds)
    bce_o = -(pos_equal_one * jnp.log(so + 1e-6)
              + (1 - pos_equal_one) * jnp.log(1 - so + 1e-6))
    obj_loss = jnp.mean(bce_o)
    return reg_loss + conf_loss + obj_loss


if __name__ == "__main__":
    # ---- 1) WeightedSmoothL1Loss (the spec module), unreduced output ----
    B, Na, K = 2, 512, 7
    k1, k2, k3 = jax.random.split(jax.random.PRNGKey(0), 3)
    x_in = jax.random.normal(k1, (B, Na, K), dtype=jnp.float32)
    tgt_in = jax.random.normal(k2, (B, Na, K), dtype=jnp.float32)
    tgt_in = tgt_in.at[0, 0, 3].set(jnp.nan).at[1, 5, 0].set(jnp.nan)  # exercise NaN path
    w_in = jax.random.uniform(k3, (B, Na), dtype=jnp.float32)

    loss_el = weighted_smooth_l1_loss(x_in, tgt_in, w_in, beta=1.0 / 9.0,
                                      tile_anchors=128)
    jax.block_until_ready(loss_el)
    ref_el = _reference_wsl1(x_in, tgt_in, w_in, 1.0 / 9.0)
    assert loss_el.shape == (B, Na, K)
    assert jnp.allclose(loss_el, ref_el, rtol=1e-5, atol=1e-5)

    # ---- 2) full PointPillar multiclass loss that embeds it ----
    B, A, C, H, W = 2, 2, 3, 32, 128          # H*W = 4096 -> S = 32 sublane tiles
    args = dict(num_class=C, cls_weight=1.0, reg_coe=2.0)
    k1, k2, k3, k4, k5, k6 = jax.random.split(jax.random.PRNGKey(0), 6)
    psm = jax.random.normal(k1, (B, A * C, H, W), dtype=jnp.float32)
    rm = jax.random.normal(k2, (B, A * 7, H, W), dtype=jnp.float32)
    obj = jax.random.normal(k3, (B, A, H, W), dtype=jnp.float32)
    targets = jax.random.normal(k4, (B, H, W, A * 7), dtype=jnp.float32)
    pos_equal_one = jax.random.bernoulli(k5, 0.1, (B, H, W, A)).astype(jnp.float32)
    class_ids = jax.random.randint(k6, (B, H, W, A), 0, C, dtype=jnp.int32)

    total, conf, reg, objl = point_pillar_loss_multiclass(
        psm, rm, obj, targets, pos_equal_one, class_ids,
        tile_positions=2048, **args)          # 2048 positions/tile -> grid (2, 2)
    jax.block_until_ready(total)

    ref_total = _reference_pp_loss(psm, rm, obj, targets, pos_equal_one,
                                   class_ids, **args)
    jax.block_until_ready(ref_total)
    assert jnp.isfinite(total)
    assert jnp.allclose(total, ref_total, rtol=2e-3, atol=2e-3), (total, ref_total)
    print("KERNEL_OK")
</pallas_src>

<mosaic_0001>
module attributes {stable_mosaic.version = 11 : i64} {
  func.func @_wsl1_kernel(%arg0: i32, %arg1: i32, %arg2: memref<1x128x7xf32, #tpu.memory_space<vmem>>, %arg3: memref<1x128x7xf32, #tpu.memory_space<vmem>>, %arg4: memref<1x128x1xf32, #tpu.memory_space<vmem>>, %arg5: memref<1x128x7xf32, #tpu.memory_space<vmem>>) attributes {dimension_semantics = [#tpu.dimension_semantics<parallel>, #tpu.dimension_semantics<parallel>], iteration_bounds = array<i64: 2, 4>, scalar_prefetch = 0 : i64, scratch_operands = 0 : i64, tpu.core_type = #tpu.core_type<tc>, window_params = [{transform_indices = @transform_0, window_bounds = array<i64: 1, 128, 7>}, {transform_indices = @transform_1, window_bounds = array<i64: 1, 128, 7>}, {transform_indices = @transform_2, window_bounds = array<i64: 1, 128, 1>}, {transform_indices = @transform_3, window_bounds = array<i64: 1, 128, 7>}]} {
    %c0 = arith.constant 0 : index
    %c0_0 = arith.constant 0 : index
    %c0_1 = arith.constant 0 : index
    %0 = vector.load %arg2[%c0, %c0_0, %c0_1] : memref<1x128x7xf32, #tpu.memory_space<vmem>>, vector<1x128x7xf32>
    %1 = vector.shape_cast %0 : vector<1x128x7xf32> to vector<128x7xf32>
    %c0_2 = arith.constant 0 : index
    %c0_3 = arith.constant 0 : index
    %c0_4 = arith.constant 0 : index
    %2 = vector.load %arg3[%c0_2, %c0_3, %c0_4] : memref<1x128x7xf32, #tpu.memory_space<vmem>>, vector<1x128x7xf32>
    %3 = vector.shape_cast %2 : vector<1x128x7xf32> to vector<128x7xf32>
    %c0_5 = arith.constant 0 : index
    %c0_6 = arith.constant 0 : index
    %c0_7 = arith.constant 0 : index
    %4 = vector.load %arg4[%c0_5, %c0_6, %c0_7] : memref<1x128x1xf32, #tpu.memory_space<vmem>>, vector<1x128x1xf32>
    %5 = vector.shape_cast %4 : vector<1x128x1xf32> to vector<128x1xf32>
    %6 = arith.cmpf one, %3, %3 : vector<128x7xf32>
    %7 = arith.select %6, %1, %3 : vector<128x7xi1>, vector<128x7xf32>
    %8 = arith.subf %1, %7 : vector<128x7xf32>
    %9 = math.absf %8 : vector<128x7xf32>
    %cst = arith.constant 0.111111112 : f32
    %10 = vector.broadcast %cst : f32 to vector<128x7xf32>
    %11 = arith.cmpf olt, %9, %10 : vector<128x7xf32>
    %cst_8 = arith.constant 5.000000e-01 : f32
    %12 = vector.broadcast %cst_8 : f32 to vector<128x7xf32>
    %13 = arith.mulf %12, %9 : vector<128x7xf32>
    %14 = arith.mulf %13, %9 : vector<128x7xf32>
    %cst_9 = arith.constant 0.111111112 : f32
    %15 = vector.broadcast %cst_9 : f32 to vector<128x7xf32>
    %16 = arith.divf %14, %15 : vector<128x7xf32>
    %cst_10 = arith.constant 0.055555556 : f32
    %17 = vector.broadcast %cst_10 : f32 to vector<128x7xf32>
    %18 = arith.subf %9, %17 : vector<128x7xf32>
    %19 = arith.select %11, %16, %18 : vector<128x7xi1>, vector<128x7xf32>
    %20 = vector.broadcast %5 : vector<128x1xf32> to vector<128x7xf32>
    %21 = arith.mulf %19, %20 : vector<128x7xf32>
    %c0_11 = arith.constant 0 : index
    %c0_12 = arith.constant 0 : index
    %c0_13 = arith.constant 0 : index
    %22 = vector.load %arg5[%c0_11, %c0_12, %c0_13] : memref<1x128x7xf32, #tpu.memory_space<vmem>>, vector<1x128x7xf32>
    %23 = vector.shape_cast %22 : vector<1x128x7xf32> to vector<128x7xf32>
    %24 = vector.shape_cast %21 : vector<128x7xf32> to vector<1x128x7xf32>
    tpu.vector_store %arg5[%c0_11, %c0_12, %c0_13], %24 {strides = array<i32>} : memref<1x128x7xf32, #tpu.memory_space<vmem>>, vector<1x128x7xf32>,
    return
  }
  func.func @transform_0(%arg0: i32, %arg1: i32) -> (i32, i32, i32) {
    %c0_i32 = arith.constant 0 : i32
    %c0_i32_0 = arith.constant 0 : i32
    return %arg0, %arg1, %c0_i32 : i32, i32, i32
  }
  func.func @transform_1(%arg0: i32, %arg1: i32) -> (i32, i32, i32) {
    %c0_i32 = arith.constant 0 : i32
    %c0_i32_0 = arith.constant 0 : i32
    return %arg0, %arg1, %c0_i32 : i32, i32, i32
  }
  func.func @transform_2(%arg0: i32, %arg1: i32) -> (i32, i32, i32) {
    %c0_i32 = arith.constant 0 : i32
    %c0_i32_0 = arith.constant 0 : i32
    return %arg0, %arg1, %c0_i32 : i32, i32, i32
  }
  func.func @transform_3(%arg0: i32, %arg1: i32) -> (i32, i32, i32) {
    %c0_i32 = arith.constant 0 : i32
    %c0_i32_0 = arith.constant 0 : i32
    return %arg0, %arg1, %c0_i32 : i32, i32, i32
  }
}

</mosaic_0001>

<bundles_post_ra>
// kernel: tpu_custom_call.1
= control target key start
LH: loop header
LB: loop body
LE: loop exit
PB: predicated region body
PF: predicated region fallthrough
CT: control target
= control target key end

     0   :  { %s869_s12 = smov 0   ;;  %s871_s13 = smov 0   ;;  %s1103_s0 = inlined_call_operand.vmem [shape: f32[2,512,7], index: 0, kind: input, shape index: {}]   ;;  %s1104_s1 = inlined_call_operand.vmem [shape: f32[2,512,7], index: 1, kind: input, shape index: {}]   ;;  %s1105_s2 = inlined_call_operand.vmem [shape: f32[2,512,1], index: 2, kind: input, shape index: {}]   ;;  %s1106_s3 = inlined_call_operand.vmem [shape: f32[2,512,7], index: 3, kind: output, shape index: {}]  }
   0x1   :  { %s873_s14 = smov 0   ;;  %s875_s15 = smov 0  }
   0x2   :  { %s877_s16 = smov 0  }
   0x3 LB: > { %s22_s17 = sadd.s32 1, %s838_s14  ;;  %s25_s18 = sadd.s32 1, %s842_s15  ;;  %s846_s16 = sphi %s877_s16, %s13_s16   ;;  %s842_s15 = sphi %s875_s15, %s1110_s15   ;;  %s838_s14 = sphi %s873_s14, %s1109_s14   ;;  %s834_s13 = sphi %s871_s13, %s1108_s13   ;;  %s830_s12 = sphi %s869_s12, %s1107_s12  }
   0x4   : > { %p23_p0 = scmp.ge.s32.totalorder %s22_s17, 4  ;;  %p734_p1 = scmp.ge.s32.totalorder %s846_s16, 1 }
   0x5   : > { %p192_p2 = scmp.lt.s32.totalorder %s846_s16, 9 }
   0x6   : > { %s1112_s17 = smov (%p23_p0, %s22_s17), 0  ;;  %s1114_s18 = smov (!%p23_p0, %s25_s18), %s842_s15 }
   0x7   : > { %p193_p3 = pnand %p734_p1, %p192_p2  ;;  %p27_p4 = scmp.ge.s32.totalorder %s1114_s18, 2 }
   0x8   : > { %s735_s19 = sshll.u32 (!%p193_p3), %s830_s12, 4  ;;  %p243_p5 = scmp.lt.s32.totalorder (!%p193_p3), %s834_s13, 1  ;;  %v848_v0 = vmov (!%p193_p3), 0  }
   0x9   : > { %s1116_s18 = smov (%p27_p4, %s1114_s18), 0  ;;  %196 = sbr.rel (%p193_p3) target bundleno = 181 (0xb5), region = 32 }
   0xa   : > { %807 = vset.pattern.permute.xlu1 (!%p193_p3), %v848_v0  ;;  %806 = vset.pattern.permute.xlu0 (!%p193_p3), %v848_v0  ;;  %p245_p6 = scmp.lt.s32.totalorder (!%p193_p3), %s735_s19, 63 }
  0x10   : > { %s1118_s13 = smov (!%p243_p5, %s834_s13), 1  ;;  %s1120_s19 = smov (!%p245_p6, %s735_s19), 63 }
  0x11   : > { %s736_s20 = sshll.u32 %s1118_s13, 6 }
  0x12   : > { %s248_s21 = sadd.s32 %s736_s20, %s1120_s19 }
  0x13   : > { %s899_s22 = sshll.u32 %s248_s21, 3 }
  0x14   : > { %s270_s25 = scalar_lea.vmem %s1105_s2, %s899_s22  ;;  %s909_s28 = scalar_lea.vmem %s1104_s1, %s899_s22 }
  0x15   : > { %v316_v1 = vld [vmem:[%s270_s25 + $0x10] sm:$0xff]  ;;  %v314_v2 = vld [vmem:[%s270_s25] sm:$0xff]  ;;  %v317_v3 = vld [vmem:[%s270_s25 + $0x18] sm:$0xff]  ;;  %s915_s4 = scalar_lea.vmem %s1103_s0, %s899_s22  ;;  %s1003_s7 = scalar_lea.vmem %s1106_s3, %s899_s22 }
  0x16   : > { %503 = vperm.xlu1 %807, %v316_v1   ;;  %493 = vperm.xlu0 %806, %v314_v2   ;;  %v315_v4 = vld [vmem:[%s270_s25 + $0x8] sm:$0xff]  ;;  %v318_v6 = vld [vmem:[%s270_s25 + $0x20] sm:$0xff]  ;;  %v321_v7 = vld [vmem:[%s270_s25 + $0x38] sm:$0xff] }
  0x17   : > { %v319_v5 = vld [vmem:[%s270_s25 + $0x28] sm:$0xff]  ;;  %v320_v8 = vld [vmem:[%s270_s25 + $0x30] sm:$0xff]  ;;  %v322_v10 = vld [vmem:[%s270_s25 + $0x40] sm:$0xff] }
  0x18   : > { %v323_v9 = vld [vmem:[%s270_s25 + $0x48] sm:$0xff]  ;;  %v325_v11 = vld [vmem:[%s270_s25 + $0x58] sm:$0xff]  ;;  %v324_v12 = vld [vmem:[%s270_s25 + $0x50] sm:$0xff] }
  0x19   : > { %v327_v13 = vld [vmem:[%s270_s25 + $0x68] sm:$0xff]  ;;  %v326_v14 = vld [vmem:[%s270_s25 + $0x60] sm:$0xff]  ;;  %v329_v15 = vld [vmem:[%s270_s25 + $0x78] sm:$0xff] }
  0x1a   : > { %508 = vperm.xlu1 %807, %v317_v3   ;;  %498 = vperm.xlu0 %806, %v315_v4   ;;  %v328_v16 = vld [vmem:[%s270_s25 + $0x70] sm:$0xff]  ;;  %v298_v18 = vld [vmem:[%s909_s28] sm:$0xff]  ;;  %v301_v21 = vld [vmem:[%s909_s28 + $0x18] sm:$0xff] }
  0x1b   : > { %v300_v17 = vld [vmem:[%s909_s28 + $0x10] sm:$0xff]  ;;  %v282_v20 = vld [vmem:[%s915_s4] sm:$0xff]  ;;  %vm330_vm1 = vcmp.ne.f32.partialorder %v298_v18, %v298_v18  ;;  %v299_v22 = vld [vmem:[%s909_s28 + $0x8] sm:$0xff]  ;;  %vm333_vm2 = vcmp.ne.f32.partialorder %v301_v21, %v301_v21 }
  0x1c   : > { %v284_v19 = vld [vmem:[%s915_s4 + $0x10] sm:$0xff]  ;;  %vm332_vm0 = vcmp.ne.f32.partialorder %v300_v17, %v300_v17  ;;  %v303_v24 = vld [vmem:[%s909_s28 + $0x28] sm:$0xff]  ;;  %v346_v25 = vsel %vm330_vm1, %v282_v20, %v298_v18  ;;  %v285_v26 = vld [vmem:[%s915_s4 + $0x18] sm:$0xff]  ;;  %vm331_vm3 = vcmp.ne.f32.partialorder %v299_v22, %v299_v22 }
  0x1d   : > { %v348_v23 = vsel %vm332_vm0, %v284_v19, %v300_v17  ;;  %v283_v27 = vld [vmem:[%s915_s4 + $0x8] sm:$0xff]  ;;  %vm335_vm4 = vcmp.ne.f32.partialorder %v303_v24, %v303_v24  ;;  %v362_v30 = vsub.f32 %v282_v20, %v346_v25  ;;  %v302_v31 = vld [vmem:[%s909_s28 + $0x20] sm:$0xff]  ;;  %v349_v32 = vsel %vm333_vm2, %v285_v26, %v301_v21  ;;  %v305_v41 = vld [vmem:[%s909_s28 + $0x38] sm:$0xff] }
  0x1e   : > { %518 = vperm.xlu1 %807, %v319_v5   ;;  %513 = vperm.xlu0 %806, %v318_v6   ;;  %v364_v28 = vsub.f32 %v284_v19, %v348_v23  ;;  %v287_v29 = vld [vmem:[%s915_s4 + $0x28] sm:$0xff]  ;;  %v347_v33 = vsel %vm331_vm3, %v283_v27, %v299_v22  ;;  %v286_v36 = vld [vmem:[%s915_s4 + $0x20] sm:$0xff]  ;;  %vm334_vm5 = vcmp.ne.f32.partialorder %v302_v31, %v302_v31  ;;  %v289_v44 = vld [vmem:[%s915_s4 + $0x38] sm:$0xff]  ;;  %vm587_vm0 = vcmask 56320  }
  0x1f   : > { %v351_v34 = vsel %vm335_vm4, %v287_v29, %v303_v24  ;;  %v929_v37 = vand.u32 2147483647, %v362_v30  ;;  %v365_v38 = vsub.f32 %v285_v26, %v349_v32  ;;  %v363_v39 = vsub.f32 %v283_v27, %v347_v33  ;;  %v304_v48 = vld [vmem:[%s909_s28 + $0x30] sm:$0xff]  ;;  %v307_v51 = vld [vmem:[%s909_s28 + $0x48] sm:$0xff]  ;;  %v306_v52 = vld [vmem:[%s909_s28 + $0x40] sm:$0xff] }
  0x20   : > { %v380_v35 = vand.u32 2147483647, %v364_v28  ;;  %v367_v40 = vsub.f32 %v287_v29, %v351_v34  ;;  %v350_v42 = vsel %vm334_vm5, %v286_v36, %v302_v31  ;;  %vm337_vm6 = vcmp.ne.f32.partialorder %v305_v41, %v305_v41  ;;  %v288_v55 = vld [vmem:[%s915_s4 + $0x30] sm:$0xff]  ;;  %v291_v59 = vld [vmem:[%s915_s4 + $0x48] sm:$0xff]  ;;  %v290_v63 = vld [vmem:[%s915_s4 + $0x40] sm:$0xff] }
  0x21   : > { %v410_v45 = vmul.f32 0.5, %v929_v37  ;;  %v934_v46 = vand.u32 2147483647, %v365_v38  ;;  %v936_v47 = vand.u32 2147483647, %v363_v39  ;;  %v366_v50 = vsub.f32 %v286_v36, %v350_v42  ;;  %v309_v3 = vld [vmem:[%s909_s28 + $0x58] sm:$0xff] }
  0x22   : > { %528 = vperm.xlu1 %807, %v321_v7   ;;  %523 = vperm.xlu0 %806, %v320_v8   ;;  %v412_v43 = vmul.f32 0.5, %v380_v35  ;;  %v939_v49 = vand.u32 2147483647, %v367_v40  ;;  %vm396_vm7 = vcmp.lt.f32.partialorder %v380_v35, 0.11111111  ;;  %v353_v54 = vsel %vm337_vm6, %v289_v44, %v305_v41  ;;  %v308_v7 = vld [vmem:[%s909_s28 + $0x50] sm:$0xff] }
  0x23   : > { %vm336_vm8 = vcmp.ne.f32.partialorder %v304_v48, %v304_v48  ;;  %v426_v56 = vmul.f32 %v410_v45, %v929_v37  ;;  %v413_v57 = vmul.f32 0.5, %v934_v46  ;;  %v411_v58 = vmul.f32 0.5, %v936_v47  ;;  %v292_v18 = vld [vmem:[%s915_s4 + $0x50] sm:$0xff]  ;;  %v311_v22 = vld [vmem:[%s909_s28 + $0x68] sm:$0xff]  ;;  %v310_v27 = vld [vmem:[%s909_s28 + $0x60] sm:$0xff] }
  0x24   : > { %v428_v53 = vmul.f32 %v412_v43, %v380_v35  ;;  %vm339_vm9 = vcmp.ne.f32.partialorder %v307_v51, %v307_v51  ;;  %v749_v60 = vadd.f32 -0.055555556, %v380_v35  ;;  %v415_v61 = vmul.f32 0.5, %v939_v49  ;;  %v295_v35 = vld [vmem:[%s915_s4 + $0x68] sm:$0xff]  ;;  %v294_v39 = vld [vmem:[%s915_s4 + $0x60] sm:$0xff]  ;;  %v313_v43 = vld [vmem:[%s909_s28 + $0x78] sm:$0xff] }
  0x25   : > { %v949_v62 = vand.u32 2147483647, %v366_v50  ;;  %vm338_vm10 = vcmp.ne.f32.partialorder %v306_v52, %v306_v52  ;;  %vm394_vm11 = vcmp.lt.f32.partialorder %v929_v37, 0.11111111  ;;  %v747_v0 = vadd.f32 -0.055555556, %v929_v37 }
  0x26   : > { %538 = vperm.xlu1 %807, %v323_v9   ;;  %533 = vperm.xlu0 %806, %v322_v10   ;;  %v369_v1 = vsub.f32 %v289_v44, %v353_v54  ;;  %v352_v2 = vsel %vm336_vm8, %v288_v55, %v304_v48  ;;  %v445_v4 = vmul.f32 9.0, %v428_v53  ;;  %vm397_vm12 = vcmp.lt.f32.partialorder %v934_v46, 0.11111111  ;;  %v312_v44 = vld [vmem:[%s909_s28 + $0x70] sm:$0xff] }
  0x27   : > { %v750_v5 = vadd.f32 -0.055555556, %v934_v46  ;;  %v355_v6 = vsel %vm339_vm9, %v291_v59, %v307_v51  ;;  %v443_v8 = vmul.f32 9.0, %v426_v56  ;;  %v429_v9 = vmul.f32 %v413_v57, %v934_v46  ;;  %v297_v56 = vld [vmem:[%s915_s4 + $0x78] sm:$0xff]  ;;  %v296_v57 = vld [vmem:[%s915_s4 + $0x70] sm:$0xff] }
  0x28   : > { %v427_v10 = vmul.f32 %v411_v58, %v936_v47  ;;  %vm341_vm13 = vcmp.ne.f32.partialorder %v309_v3, %v309_v3  ;;  %vm395_vm14 = vcmp.lt.f32.partialorder %v936_v47, 0.11111111  ;;  %v371_v17 = vsub.f32 %v291_v59, %v355_v6 }
  0x29   : > { %vm340_vm15 = vcmp.ne.f32.partialorder %v308_v7, %v308_v7  ;;  %v477_v19 = vsel %vm396_vm7, %v445_v4, %v749_v60  ;;  %v748_v20 = vadd.f32 -0.055555556, %v936_v47  ;;  %vm399_vm1 = vcmp.lt.f32.partialorder %v939_v49, 0.11111111 }
  0x2a   : > { %548 = vperm.xlu1 %807, %v325_v11   ;;  %543 = vperm.xlu0 %806, %v324_v12   ;;  %v354_v11 = vsel %vm338_vm10, %v290_v63, %v306_v52  ;;  %v431_v12 = vmul.f32 %v415_v61, %v939_v49  ;;  %v446_v23 = vmul.f32 9.0, %v429_v9  ;;  %v444_v24 = vmul.f32 9.0, %v427_v10 }
  0x2b   : > { %v370_v21 = vsub.f32 %v290_v63, %v354_v11  ;;  %v752_v25 = vadd.f32 -0.055555556, %v939_v49  ;;  %v356_v31 = vsel %vm340_vm15, %v292_v18, %v308_v7  ;;  %v475_v32 = vsel %vm394_vm11, %v443_v8, %v747_v0 }
  0x2c   : > { %v448_v28 = vmul.f32 9.0, %v431_v12  ;;  %v979_v34 = vand.u32 2147483647, %v371_v17  ;;  %vm343_vm2 = vcmp.ne.f32.partialorder %v311_v22, %v311_v22  ;;  %vm398_vm3 = vcmp.lt.f32.partialorder %v949_v62, 0.11111111 }
  0x2d   : > { %v983_v36 = vand.u32 2147483647, %v370_v21  ;;  %vm342_vm4 = vcmp.ne.f32.partialorder %v310_v27, %v310_v27  ;;  %v478_v40 = vsel %vm397_vm12, %v446_v23, %v750_v5  ;;  %v476_v37 = vsel %vm395_vm14, %v444_v24, %v748_v20 }
  0x2e   : > { %558 = vperm.xlu1 %807, %v327_v13   ;;  %553 = vperm.xlu0 %806, %v326_v14   ;;  %v414_v13 = vmul.f32 0.5, %v949_v62  ;;  %v368_v14 = vsub.f32 %v288_v55, %v352_v2  ;;  %v751_v41 = vadd.f32 -0.055555556, %v949_v62  ;;  %v372_v42 = vsub.f32 %v292_v18, %v356_v31 }
  0x2f   : > { %v480_v45 = vsel %vm399_vm1, %v448_v28, %v752_v25  ;;  %v359_v51 = vsel %vm343_vm2, %v295_v35, %v311_v22  ;;  %v419_v47 = vmul.f32 0.5, %v979_v34  ;;  %v358_v52 = vsel %vm342_vm4, %v294_v39, %v310_v27 }
  0x30   : > { %v430_v29 = vmul.f32 %v414_v13, %v949_v62  ;;  %v974_v30 = vand.u32 2147483647, %v368_v14  ;;  %v418_v54 = vmul.f32 0.5, %v983_v36  ;;  %vm345_vm6 = vcmp.ne.f32.partialorder %v313_v43, %v313_v43 }
  0x31   : > { %vm344_vm7 = vcmp.ne.f32.partialorder %v312_v44, %v312_v44  ;;  %v1010_v60 = vand.u32 2147483647, %v372_v42  ;;  %v375_v61 = vsub.f32 %v295_v35, %v359_v51  ;;  %v374_v2 = vsub.f32 %v294_v39, %v358_v52 }
  0x32   : > { %568 = vperm.xlu1 %807, %v329_v15   ;;  %563 = vperm.xlu0 %806, %v328_v16   ;;  %v293_v15 = vld [vmem:[%s915_s4 + $0x58] sm:$0xff]  ;;  %v964_v16 = vand.u32 2147483647, %v369_v1  ;;  %v447_v48 = vmul.f32 9.0, %v430_v29  ;;  %v416_v50 = vmul.f32 0.5, %v974_v30  ;;  %v361_v4 = vsel %vm345_vm6, %v297_v56, %v313_v43 }
  0x33   : > { %v357_v26 = vsel %vm341_vm13, %v293_v15, %v309_v3  ;;  %vm400_vm8 = vcmp.lt.f32.partialorder %v974_v30, 0.11111111  ;;  %v360_v5 = vsel %vm344_vm7, %v296_v57, %v312_v44  ;;  %v753_v62 = vadd.f32 -0.055555556, %v974_v30 }
  0x34   : > { %v417_v33 = vmul.f32 0.5, %v964_v16  ;;  %v373_v38 = vsub.f32 %v293_v15, %v357_v26  ;;  %vm401_vm5 = vcmp.lt.f32.partialorder %v964_v16, 0.11111111  ;;  %v479_v63 = vsel %vm398_vm3, %v447_v48, %v751_v41 }
  0x35   : > { %v754_v0 = vadd.f32 -0.055555556, %v964_v16  ;;  %v432_v1 = vmul.f32 %v416_v50, %v974_v30  ;;  %v435_v8 = vmul.f32 %v419_v47, %v979_v34  ;;  %v434_v9 = vmul.f32 %v418_v54, %v983_v36 }
  0x36   : > { %v433_v46 = vmul.f32 %v417_v33, %v964_v16  ;;  %v1006_v55 = vand.u32 2147483647, %v373_v38  ;;  %v420_v13 = vmul.f32 0.5, %v1010_v60  ;;  %v1026_v14 = vand.u32 2147483647, %v375_v61 }
  0x37   : > { %v449_v15 = vmul.f32 9.0, %v432_v1  ;;  %v1028_v17 = vand.u32 2147483647, %v374_v2  ;;  %v377_v18 = vsub.f32 %v297_v56, %v361_v4  ;;  %vm403_vm9 = vcmp.lt.f32.partialorder %v979_v34, 0.11111111 }
  0x38   : > { %v450_v3 = vmul.f32 9.0, %v433_v46  ;;  %v421_v10 = vmul.f32 0.5, %v1006_v55  ;;  %v756_v21 = vadd.f32 -0.055555556, %v979_v34  ;;  %vm402_vm10 = vcmp.lt.f32.partialorder %v983_v36, 0.11111111 }
  0x39   : > { %v452_v24 = vmul.f32 9.0, %v435_v8  ;;  %v451_v25 = vmul.f32 9.0, %v434_v9  ;;  %v755_v26 = vadd.f32 -0.055555556, %v983_v36  ;;  %v436_v16 = vmul.f32 %v420_v13, %v1010_v60 }
  0x3a   : > { %v482_v20 = vsel %vm401_vm5, %v450_v3, %v754_v0  ;;  %v437_v27 = vmul.f32 %v421_v10, %v1006_v55  ;;  %v423_v31 = vmul.f32 0.5, %v1026_v14  ;;  %v422_v33 = vmul.f32 0.5, %v1028_v17 }
  0x3b   : > { %v393_v35 = vand.u32 2147483647, %v377_v18  ;;  %vm405_vm11 = vcmp.lt.f32.partialorder %v1006_v55, 0.11111111  ;;  %v758_v39 = vadd.f32 -0.055555556, %v1006_v55  ;;  %v484_v30 = vsel %vm403_vm9, %v452_v24, %v756_v21 }
  0x3c   : > { %v483_v41 = vsel %vm402_vm10, %v451_v25, %v755_v26  ;;  %v454_v42 = vmul.f32 9.0, %v437_v27  ;;  %v757_v43 = vadd.f32 -0.055555556, %v1010_v60  ;;  %v453_v48 = vmul.f32 9.0, %v436_v16 }
  0x3d   : > { %v439_v50 = vmul.f32 %v423_v31, %v1026_v14  ;;  %vm404_vm12 = vcmp.lt.f32.partialorder %v1010_v60, 0.11111111  ;;  %v438_v51 = vmul.f32 %v422_v33, %v1028_v17  ;;  %v425_v46 = vmul.f32 0.5, %v393_v35 }
  0x3e   : > { %v486_v52 = vsel %vm405_vm11, %v454_v42, %v758_v39  ;;  %vm407_vm13 = vcmp.lt.f32.partialorder %v1026_v14, 0.11111111  ;;  %v485_v56 = vsel %vm404_vm12, %v453_v48, %v757_v43  ;;  %vm406_vm14 = vcmp.lt.f32.partialorder %v1028_v17, 0.11111111 }
  0x3f   : > { %v441_v60 = vmul.f32 %v425_v46, %v393_v35  ;;  %v762_v3 = vadd.f32 -0.055555556, %v393_v35  ;;  %vm409_vm15 = vcmp.lt.f32.partialorder %v393_v35, 0.11111111 }
  0x95   : > { %v504_v53 = vpop.permute.xlu1 %503  ;;  %v494_v49 = vpop.permute.xlu0 %493 }
  0x96   : > { %v573_v58 = vmul.f32 %v504_v53, %v477_v19  ;;  %v571_v59 = vmul.f32 %v494_v49, %v475_v32  ;;  %v376_v19 = vsub.f32 %v296_v57, %v360_v5  ;;  %v481_v32 = vsel %vm400_vm8, %v449_v15, %v753_v62 }
  0x97   : > { %v760_v53 = vadd.f32 -0.055555556, %v1026_v14  ;;  %v456_v57 = vmul.f32 9.0, %v439_v50  ;;  %v458_v5 = vmul.f32 9.0, %v441_v60 }
  0x98   : > { %590 = vst.msk [vmem:[%s1003_s7 + $0x10] sm:$0xff] %vm587_vm0, %v573_v58  ;;  %588 = vst.msk [vmem:[%s1003_s7] sm:$0xff] %vm587_vm0, %v571_v59  ;;  %v392_v38 = vand.u32 2147483647, %v376_v19  ;;  %v455_v58 = vmul.f32 9.0, %v438_v51 }
  0x99   : > { %v509_v6 = vpop.permute.xlu1 %508  ;;  %v499_v7 = vpop.permute.xlu0 %498  ;;  %v759_v59 = vadd.f32 -0.055555556, %v1028_v17  ;;  %v488_v2 = vsel %vm407_vm13, %v456_v57, %v760_v53 }
  0x9a   : > { %v574_v11 = vmul.f32 %v509_v6, %v478_v40  ;;  %v572_v12 = vmul.f32 %v499_v7, %v476_v37  ;;  %v424_v47 = vmul.f32 0.5, %v392_v38  ;;  %v761_v7 = vadd.f32 -0.055555556, %v392_v38 }
  0x9b   : > { %v487_v4 = vsel %vm406_vm14, %v455_v58, %v759_v59  ;;  %vm408_vm1 = vcmp.lt.f32.partialorder %v392_v38, 0.11111111 }
  0x9c   : > { %591 = vst.msk [vmem:[%s1003_s7 + $0x18] sm:$0xff] %vm587_vm0, %v574_v11  ;;  %589 = vst.msk [vmem:[%s1003_s7 + $0x8] sm:$0xff] %vm587_vm0, %v572_v12  ;;  %v440_v61 = vmul.f32 %v424_v47, %v392_v38  ;;  %v490_v11 = vsel %vm409_vm15, %v458_v5, %v762_v3 }
  0x9d   : > { %v519_v22 = vpop.permute.xlu1 %518  ;;  %v514_v23 = vpop.permute.xlu0 %513 }
  0x9e   : > { %v576_v28 = vmul.f32 %v519_v22, %v480_v45  ;;  %v575_v29 = vmul.f32 %v514_v23, %v479_v63  ;;  %v457_v6 = vmul.f32 9.0, %v440_v61 }
  0xa0   : > { %593 = vst.msk [vmem:[%s1003_s7 + $0x28] sm:$0xff] %vm587_vm0, %v576_v28  ;;  %592 = vst.msk [vmem:[%s1003_s7 + $0x20] sm:$0xff] %vm587_vm0, %v575_v29  ;;  %v489_v12 = vsel %vm408_vm1, %v457_v6, %v761_v7 }
  0xa1   : > { %v529_v40 = vpop.permute.xlu1 %528  ;;  %v524_v37 = vpop.permute.xlu0 %523 }
  0xa2   : > { %v578_v44 = vmul.f32 %v529_v40, %v482_v20  ;;  %v577_v45 = vmul.f32 %v524_v37, %v481_v32 }
  0xa4   : > { %595 = vst.msk [vmem:[%s1003_s7 + $0x38] sm:$0xff] %vm587_vm0, %v578_v44  ;;  %594 = vst.msk [vmem:[%s1003_s7 + $0x30] sm:$0xff] %vm587_vm0, %v577_v45 }
  0xa5   : > { %v539_v34 = vpop.permute.xlu1 %538  ;;  %v534_v36 = vpop.permute.xlu0 %533 }
  0xa6   : > { %v580_v49 = vmul.f32 %v539_v34, %v484_v30  ;;  %v579_v54 = vmul.f32 %v534_v36, %v483_v41 }
  0xa8   : > { %597 = vst.msk [vmem:[%s1003_s7 + $0x48] sm:$0xff] %vm587_vm0, %v580_v49  ;;  %596 = vst.msk [vmem:[%s1003_s7 + $0x40] sm:$0xff] %vm587_vm0, %v579_v54 }
  0xa9   : > { %v549_v55 = vpop.permute.xlu1 %548  ;;  %v544_v63 = vpop.permute.xlu0 %543 }
  0xaa   : > { %v582_v0 = vmul.f32 %v549_v55, %v486_v52  ;;  %v581_v1 = vmul.f32 %v544_v63, %v485_v56 }
  0xac   : > { %599 = vst.msk [vmem:[%s1003_s7 + $0x58] sm:$0xff] %vm587_vm0, %v582_v0  ;;  %598 = vst.msk [vmem:[%s1003_s7 + $0x50] sm:$0xff] %vm587_vm0, %v581_v1 }
  0xad   : > { %v559_v62 = vpop.permute.xlu1 %558  ;;  %v554_v8 = vpop.permute.xlu0 %553 }
  0xae   : > { %v584_v9 = vmul.f32 %v559_v62, %v488_v2  ;;  %v583_v10 = vmul.f32 %v554_v8, %v487_v4 }
  0xb0   : > { %601 = vst.msk [vmem:[%s1003_s7 + $0x68] sm:$0xff] %vm587_vm0, %v584_v9  ;;  %600 = vst.msk [vmem:[%s1003_s7 + $0x60] sm:$0xff] %vm587_vm0, %v583_v10 }
  0xb1   : > { %v569_v13 = vpop.permute.xlu1 %568  ;;  %v564_v14 = vpop.permute.xlu0 %563 }
  0xb2   : > { %v586_v15 = vmul.f32 %v569_v13, %v490_v11  ;;  %v585_v17 = vmul.f32 %v564_v14, %v489_v12 }
  0xb4   : > { %603 = vst.msk [vmem:[%s1003_s7 + $0x78] sm:$0xff] %vm587_vm0, %v586_v15  ;;  %602 = vst.msk [vmem:[%s1003_s7 + $0x70] sm:$0xff] %vm587_vm0, %v585_v17 }
  0xb5 PF: > { %s13_s16 = sadd.s32 1, %s846_s16   ;;  %s1107_s12 = smov %s838_s14 }
  0xb6   : > { %p10_p7 = scmp.ge.s32.totalorder %s13_s16, 10   ;;  %s1108_s13 = smov %s842_s15 }
  0xb7   : > { %s1109_s14 = smov %s1112_s17  ;;  %s1110_s15 = smov %s1116_s18 }
  0xb8   :  { %12 = sbr.rel (!%p10_p7) target bundleno = 3 (0x3), region = 68 }

</bundles_post_ra>
